<compile_context>
chip_gen: v6e
topology: v6e:2x2x1
jax: 0.10.0
libtpu: 0.0.40
codegen_flags: <defaults>
</compile_context>

<pallas_src>
import math

import jax
import jax.numpy as jnp
from jax.experimental import pallas as pl
from jax.experimental.pallas import tpu as pltpu

# ---- small synthetic config (same structure as ChineseCLIP ViT) ----
BATCH = 2
IN_CH = 3
IMAGE = 16
PATCH = 8
GRID = IMAGE // PATCH              # 2
NUM_PATCHES = GRID * GRID          # 4
SEQ = NUM_PATCHES + 1              # 5  (CLS + patches)
SEQ_PAD = 8                        # per-batch rows padded to a sublane tile
HIDDEN = 32
HEADS = 2
HEAD_DIM = HIDDEN // HEADS         # 16
INTER = 4 * HIDDEN                 # 128
LAYERS = 2
EPS = 1e-5
PATCH_DIM = IN_CH * PATCH * PATCH  # 192
ROWS_PAD = BATCH * SEQ_PAD         # 16 (batch folded into matmul M dim)
SCALE = 1.0 / math.sqrt(HEAD_DIM)

# embedding slab row layout: [per-row additive emb (ROWS_PAD) | pre_ln_w | pre_ln_b | pad]
_ROW_PRE_W = ROWS_PAD
_ROW_PRE_B = ROWS_PAD + 1
EMB_ROWS = ROWS_PAD + 8            # 24 (padded to sublane multiple)

# per-layer vector slab row layout (rows padded to width VEC_W = 128)
_V_LN1W, _V_LN1B, _V_BQKV, _V_BO, _V_LN2W, _V_LN2B, _V_B1, _V_B2 = range(8)
VEC_W = INTER                      # 128
WIN_W = 4 * HIDDEN + INTER         # 256  [Wq*s | Wk | Wv | Wo | W1]


# --------------------------- kernel helpers ---------------------------
def _layer_norm(x, w, b):
    m = jnp.mean(x, axis=-1, keepdims=True)
    v = jnp.mean((x - m) ** 2, axis=-1, keepdims=True)
    return (x - m) * jax.lax.rsqrt(v + EPS) * w + b


# --------------------------- fused Pallas kernel ---------------------------
def fused_kernel(patch_ref, wpatch_ref, emb_ref, mask_ref, sel_ref,
                 win_ref, w2_ref, vec_ref, out_ref, x_scr):
    layer = pl.program_id(0)

    # ---- first grid step: patch-embed matmul + CLS/pos add + pre-LN ----
    # patch rows are already scattered to padded, sublane-aligned offsets in
    # the wrapper (CLS row / pad rows are zero), so this is one dense matmul
    # plus one broadcast add — no per-batch loops, no masked stores.
    @pl.when(layer == 0)
    def _():
        pe = jnp.dot(patch_ref[...], wpatch_ref[...],
                     preferred_element_type=jnp.float32)        # (ROWS_PAD, D)
        x0 = pe + emb_ref[0:ROWS_PAD, :]
        x_scr[...] = _layer_norm(x0,
                                 emb_ref[_ROW_PRE_W:_ROW_PRE_W + 1, :],
                                 emb_ref[_ROW_PRE_B:_ROW_PRE_B + 1, :])

    # ---- per-layer weights (streamed via BlockSpec, one layer per step) ----
    ln1_w = vec_ref[_V_LN1W:_V_LN1W + 1, 0:HIDDEN]
    ln1_b = vec_ref[_V_LN1B:_V_LN1B + 1, 0:HIDDEN]
    bqkv = vec_ref[_V_BQKV:_V_BQKV + 1, 0:3 * HIDDEN]
    bo = vec_ref[_V_BO:_V_BO + 1, 0:HIDDEN]
    ln2_w = vec_ref[_V_LN2W:_V_LN2W + 1, 0:HIDDEN]
    ln2_b = vec_ref[_V_LN2B:_V_LN2B + 1, 0:HIDDEN]
    b1 = vec_ref[_V_B1:_V_B1 + 1, 0:INTER]
    b2 = vec_ref[_V_B2:_V_B2 + 1, 0:HIDDEN]

    x = x_scr[...]                                              # (ROWS_PAD, D)

    # ---- self-attention block (pre-LN), fused QKV projection ----
    h = _layer_norm(x, ln1_w, ln1_b)
    qkv = jnp.dot(h, win_ref[:, 0:3 * HIDDEN],
                  preferred_element_type=jnp.float32) + bqkv     # (ROWS_PAD, 3D)

    # attention batched over batch: one score/softmax/PV per head, with a
    # batch-block-diagonal + key-padding mask (precomputed constant).
    heads = []
    for hd in range(HEADS):
        c = hd * HEAD_DIM
        q = qkv[:, c:c + HEAD_DIM]                 # scale folded into Wq/bq
        k = qkv[:, HIDDEN + c:HIDDEN + c + HEAD_DIM]
        v = qkv[:, 2 * HIDDEN + c:2 * HIDDEN + c + HEAD_DIM]
        s = jax.lax.dot_general(q, k, (((1,), (1,)), ((), ())),
                                preferred_element_type=jnp.float32)
        s = s + mask_ref[...]                      # (ROWS_PAD, ROWS_PAD)
        s = s - jnp.max(s, axis=-1, keepdims=True)
        p = jnp.exp(s)
        p = p * pl.reciprocal(jnp.sum(p, axis=-1, keepdims=True), approx=True)
        heads.append(jnp.dot(p, v, preferred_element_type=jnp.float32))
    attn_heads = jnp.concatenate(heads, axis=1)                  # (ROWS_PAD, D)

    attn = jnp.dot(attn_heads, win_ref[:, 3 * HIDDEN:4 * HIDDEN],
                   preferred_element_type=jnp.float32) + bo
    x = x + attn

    # ---- MLP block (pre-LN, quick_gelu) ----
    h2 = _layer_norm(x, ln2_w, ln2_b)
    ff = jnp.dot(h2, win_ref[:, 4 * HIDDEN:4 * HIDDEN + INTER],
                 preferred_element_type=jnp.float32) + b1
    ff = ff * jax.nn.sigmoid(1.702 * ff)                          # quick_gelu
    ff = jnp.dot(ff, w2_ref[...], preferred_element_type=jnp.float32) + b2
    x = x + ff
    x_scr[...] = x                                                # carry residual

    # ---- last grid step: pull out only the CLS rows with one tiny matmul ----
    @pl.when(layer == LAYERS - 1)
    def _():
        out_ref[...] = jnp.dot(sel_ref[...], x,
                               preferred_element_type=jnp.float32)


# --------------------------- parameter packing ---------------------------
def _pack_params(params):
    """Pack the many tiny parameters into a few contiguous slabs."""
    wpatch = params["patch_w"].reshape(HIDDEN, PATCH_DIM).T        # (C*p*p, D)

    # additive embedding rows: row b*SEQ_PAD+0 = cls + pos[0],
    # rows +1..+NUM_PATCHES = pos[1:SEQ], pad rows zero; then pre-LN vectors.
    emb_rows = jnp.zeros((SEQ_PAD, HIDDEN), jnp.float32)
    emb_rows = emb_rows.at[0:1].set(params["cls"] + params["pos"][0:1])
    emb_rows = emb_rows.at[1:SEQ].set(params["pos"][1:SEQ])
    emb_full = jnp.tile(emb_rows, (BATCH, 1))                      # (ROWS_PAD, D)
    emb = jnp.concatenate(
        [emb_full, params["pre_ln_w"], params["pre_ln_b"],
         jnp.zeros((EMB_ROWS - ROWS_PAD - 2, HIDDEN), jnp.float32)], axis=0)

    def _row(v):
        return jnp.pad(v, ((0, 0), (0, VEC_W - v.shape[1])))

    win, w2, vec = [], [], []
    for lp in params["layers"]:
        # [Wq*scale | Wk | Wv | Wo | W1]  -> (D, 4D + INTER) = (32, 256)
        win.append(jnp.concatenate(
            [lp["wq"] * SCALE, lp["wk"], lp["wv"], lp["wo"], lp["w1"]], axis=1))
        w2.append(lp["w2"])                                        # (INTER, D)
        vec.append(jnp.concatenate([
            _row(lp["ln1_w"]), _row(lp["ln1_b"]),
            _row(jnp.concatenate([lp["bq"] * SCALE, lp["bk"], lp["bv"]], axis=1)),
            _row(lp["bo"]), _row(lp["ln2_w"]), _row(lp["ln2_b"]),
            _row(lp["b1"]), _row(lp["b2"])], axis=0))              # (8, 128)
    return wpatch, emb, jnp.stack(win), jnp.stack(w2), jnp.stack(vec)


def _attention_mask():
    """0 where query/key are in the same batch AND key is a real position,
    -1e9 elsewhere (pads and cross-batch)."""
    idx = jnp.arange(ROWS_PAD)
    same_batch = (idx[:, None] // SEQ_PAD) == (idx[None, :] // SEQ_PAD)
    real_key = (idx[None, :] % SEQ_PAD) < SEQ
    return jnp.where(same_batch & real_key, 0.0, -1e9).astype(jnp.float32)


def _cls_selector():
    """(BATCH, ROWS_PAD) one-hot rows selecting row b*SEQ_PAD (the CLS row)."""
    sel = jnp.zeros((BATCH, ROWS_PAD), jnp.float32)
    return sel.at[jnp.arange(BATCH), jnp.arange(BATCH) * SEQ_PAD].set(1.0)


# --------------------------- wrapper ---------------------------
@jax.jit
def image_intent_encoder(pixel_values, params):
    """Equivalent of ImageIntentEncoder.forward(pixel_values) (NCHW input)."""
    B = pixel_values.shape[0]
    # unfold NCHW into patch-flattened rows in (h, w) row-major order, matching
    # Conv2d(stride=patch).flatten(2).transpose(1, 2); place each batch's
    # patch rows at sublane-aligned padded offsets (row 0 = CLS, rows >= SEQ
    # = padding, both zero so they contribute nothing to the patch matmul).
    patches = pixel_values.reshape(B, IN_CH, GRID, PATCH, GRID, PATCH)
    patches = patches.transpose(0, 2, 4, 1, 3, 5).reshape(
        B, NUM_PATCHES, PATCH_DIM)
    patches_padded = jnp.zeros((BATCH, SEQ_PAD, PATCH_DIM), jnp.float32)
    patches_padded = patches_padded.at[:, 1:SEQ, :].set(patches)
    patches_padded = patches_padded.reshape(ROWS_PAD, PATCH_DIM)

    wpatch, emb, win, w2, vec = _pack_params(params)
    mask = _attention_mask()
    sel = _cls_selector()

    grid_spec = pltpu.PrefetchScalarGridSpec(
        num_scalar_prefetch=0,
        grid=(LAYERS,),
        in_specs=[
            # grid-invariant blocks (resident across layer steps)
            pl.BlockSpec((ROWS_PAD, PATCH_DIM), lambda l: (0, 0)),
            pl.BlockSpec((PATCH_DIM, HIDDEN), lambda l: (0, 0)),
            pl.BlockSpec((EMB_ROWS, HIDDEN), lambda l: (0, 0)),
            pl.BlockSpec((ROWS_PAD, ROWS_PAD), lambda l: (0, 0)),
            pl.BlockSpec((BATCH, ROWS_PAD), lambda l: (0, 0)),
            # per-layer weight slabs, streamed (auto double-buffered)
            pl.BlockSpec((None, HIDDEN, WIN_W), lambda l: (l, 0, 0)),
            pl.BlockSpec((None, INTER, HIDDEN), lambda l: (l, 0, 0)),
            pl.BlockSpec((None, 8, VEC_W), lambda l: (l, 0, 0)),
        ],
        out_specs=pl.BlockSpec((BATCH, HIDDEN), lambda l: (0, 0)),
        scratch_shapes=[pltpu.VMEM((ROWS_PAD, HIDDEN), jnp.float32)],
    )

    return pl.pallas_call(
        fused_kernel,
        out_shape=jax.ShapeDtypeStruct((BATCH, HIDDEN), jnp.float32),
        grid_spec=grid_spec,
        compiler_params=pltpu.CompilerParams(
            dimension_semantics=("arbitrary",),   # layer axis carries residuals
            vmem_limit_bytes=64 * 1024 * 1024),
    )(patches_padded, wpatch, emb, mask, sel, win, w2, vec)


# --------------------------- pure-JAX reference ---------------------------
def reference_forward(pixel_values, params):
    B = pixel_values.shape[0]
    patches = pixel_values.reshape(B, IN_CH, GRID, PATCH, GRID, PATCH)
    patches = patches.transpose(0, 2, 4, 1, 3, 5).reshape(
        B, NUM_PATCHES, PATCH_DIM)
    wpatch = params["patch_w"].reshape(HIDDEN, PATCH_DIM).T
    pe = patches @ wpatch
    cls = jnp.broadcast_to(params["cls"], (B, 1, HIDDEN))
    x = jnp.concatenate([cls, pe], axis=1) + params["pos"][None]

    def ln(x, w, b):
        m = x.mean(-1, keepdims=True)
        v = ((x - m) ** 2).mean(-1, keepdims=True)
        return (x - m) / jnp.sqrt(v + EPS) * w + b

    x = ln(x, params["pre_ln_w"], params["pre_ln_b"])
    for lp in params["layers"]:
        h = ln(x, lp["ln1_w"], lp["ln1_b"])
        q = (h @ lp["wq"] + lp["bq"]) * SCALE
        k = h @ lp["wk"] + lp["bk"]
        v = h @ lp["wv"] + lp["bv"]
        q = q.reshape(B, SEQ, HEADS, HEAD_DIM).transpose(0, 2, 1, 3)
        k = k.reshape(B, SEQ, HEADS, HEAD_DIM).transpose(0, 2, 1, 3)
        v = v.reshape(B, SEQ, HEADS, HEAD_DIM).transpose(0, 2, 1, 3)
        s = jnp.einsum("bhqd,bhkd->bhqk", q, k)
        p = jax.nn.softmax(s, axis=-1)
        o = jnp.einsum("bhqk,bhkd->bhqd", p, v)
        o = o.transpose(0, 2, 1, 3).reshape(B, SEQ, HIDDEN)
        x = x + (o @ lp["wo"] + lp["bo"])
        h2 = ln(x, lp["ln2_w"], lp["ln2_b"])
        f = h2 @ lp["w1"] + lp["b1"]
        f = f * jax.nn.sigmoid(1.702 * f)
        x = x + (f @ lp["w2"] + lp["b2"])
    return x[:, 0, :]


# --------------------------- deterministic params ---------------------------
def init_params(key):
    n_needed = 3 + LAYERS * 6
    keys = iter(jax.random.split(key, n_needed))

    def nrm(shape):
        return 0.02 * jax.random.normal(next(keys), shape, jnp.float32)

    params = {
        "patch_w": nrm((HIDDEN, IN_CH, PATCH, PATCH)),   # Conv2d weight (no bias)
        "cls": nrm((1, HIDDEN)),
        "pos": nrm((SEQ, HIDDEN)),
        "pre_ln_w": jnp.ones((1, HIDDEN), jnp.float32),
        "pre_ln_b": jnp.zeros((1, HIDDEN), jnp.float32),
        "layers": [],
    }
    for _ in range(LAYERS):
        params["layers"].append({
            "ln1_w": jnp.ones((1, HIDDEN), jnp.float32),
            "ln1_b": jnp.zeros((1, HIDDEN), jnp.float32),
            "wq": nrm((HIDDEN, HIDDEN)), "bq": jnp.zeros((1, HIDDEN), jnp.float32),
            "wk": nrm((HIDDEN, HIDDEN)), "bk": jnp.zeros((1, HIDDEN), jnp.float32),
            "wv": nrm((HIDDEN, HIDDEN)), "bv": jnp.zeros((1, HIDDEN), jnp.float32),
            "wo": nrm((HIDDEN, HIDDEN)), "bo": jnp.zeros((1, HIDDEN), jnp.float32),
            "ln2_w": jnp.ones((1, HIDDEN), jnp.float32),
            "ln2_b": jnp.zeros((1, HIDDEN), jnp.float32),
            "w1": nrm((HIDDEN, INTER)), "b1": jnp.zeros((1, INTER), jnp.float32),
            "w2": nrm((INTER, HIDDEN)), "b2": jnp.zeros((1, HIDDEN), jnp.float32),
        })
    return params


if __name__ == "__main__":
    key = jax.random.PRNGKey(0)
    pkey, ikey = jax.random.split(key)
    params = init_params(pkey)
    pixel_values = jax.random.normal(ikey, (BATCH, IN_CH, IMAGE, IMAGE),
                                     jnp.float32)

    out = image_intent_encoder(pixel_values, params)
    out = jax.block_until_ready(out)
    assert out.shape == (BATCH, HIDDEN), out.shape
    assert bool(jnp.all(jnp.isfinite(out)))

    # correctness vs pure-JAX reference (loose tol: approx reciprocal in softmax)
    ref = reference_forward(pixel_values, params)
    assert bool(jnp.allclose(out, ref, atol=5e-3, rtol=5e-3)), (
        float(jnp.max(jnp.abs(out - ref))))
    print("KERNEL_OK")
</pallas_src>

<mosaic_0001>
module attributes {stable_mosaic.version = 11 : i64} {
  func.func @fused_kernel(%arg0: i32, %arg1: memref<16x192xf32, #tpu.memory_space<vmem>>, %arg2: memref<192x32xf32, #tpu.memory_space<vmem>>, %arg3: memref<24x32xf32, #tpu.memory_space<vmem>>, %arg4: memref<16x16xf32, #tpu.memory_space<vmem>>, %arg5: memref<2x16xf32, #tpu.memory_space<vmem>>, %arg6: memref<1x32x256xf32, #tpu.memory_space<vmem>>, %arg7: memref<1x128x32xf32, #tpu.memory_space<vmem>>, %arg8: memref<1x8x128xf32, #tpu.memory_space<vmem>>, %arg9: memref<2x32xf32, #tpu.memory_space<vmem>>, %arg10: memref<16x32xf32, #tpu.memory_space<vmem>>) attributes {dimension_semantics = [#tpu.dimension_semantics<arbitrary>], iteration_bounds = array<i64: 2>, scalar_prefetch = 0 : i64, scratch_operands = 1 : i64, tpu.core_type = #tpu.core_type<tc>, window_params = [{pipeline_mode = #tpu.pipeline_mode<synchronous>, transform_indices = @transform_0, window_bounds = array<i64: 16, 192>}, {pipeline_mode = #tpu.pipeline_mode<synchronous>, transform_indices = @transform_1, window_bounds = array<i64: 192, 32>}, {pipeline_mode = #tpu.pipeline_mode<synchronous>, transform_indices = @transform_2, window_bounds = array<i64: 24, 32>}, {pipeline_mode = #tpu.pipeline_mode<synchronous>, transform_indices = @transform_3, window_bounds = array<i64: 16, 16>}, {pipeline_mode = #tpu.pipeline_mode<synchronous>, transform_indices = @transform_4, window_bounds = array<i64: 2, 16>}, {transform_indices = @transform_5, window_bounds = array<i64: 1, 32, 256>}, {transform_indices = @transform_6, window_bounds = array<i64: 1, 128, 32>}, {transform_indices = @transform_7, window_bounds = array<i64: 1, 8, 128>}, {pipeline_mode = #tpu.pipeline_mode<synchronous>, transform_indices = @transform_8, window_bounds = array<i64: 2, 32>}]} {
    %c0_i32 = arith.constant 0 : i32
    %0 = arith.cmpi eq, %arg0, %c0_i32 : i32
    %1 = arith.extui %0 : i1 to i32
    %c0_i32_0 = arith.constant 0 : i32
    %2 = arith.cmpi ne, %1, %c0_i32_0 : i32
    scf.if %2 {
      %c0_59 = arith.constant 0 : index
      %c0_60 = arith.constant 0 : index
      %133 = vector.load %arg1[%c0_59, %c0_60] : memref<16x192xf32, #tpu.memory_space<vmem>>, vector<16x192xf32>
      %c0_61 = arith.constant 0 : index
      %c0_62 = arith.constant 0 : index
      %134 = vector.load %arg2[%c0_61, %c0_62] : memref<192x32xf32, #tpu.memory_space<vmem>>, vector<192x32xf32>
      %cst_63 = arith.constant dense<0.000000e+00> : vector<16x32xf32>
      %135 = tpu.matmul %133, %134, %cst_63 {dimension_numbers = #tpu.dot_dimension_numbers<[1], [0], [0], [1], [0, 0, 1, 1], [], []>} : vector<16x192xf32>, vector<192x32xf32>, vector<16x32xf32> -> vector<16x32xf32>
      %c0_64 = arith.constant 0 : index
      %c0_65 = arith.constant 0 : index
      %136 = vector.load %arg3[%c0_64, %c0_65] : memref<24x32xf32, #tpu.memory_space<vmem>>, vector<16x32xf32>
      %137 = arith.addf %135, %136 : vector<16x32xf32>
      %c16 = arith.constant 16 : index
      %c0_66 = arith.constant 0 : index
      %138 = vector.load %arg3[%c16, %c0_66] : memref<24x32xf32, #tpu.memory_space<vmem>>, vector<1x32xf32>
      %c17 = arith.constant 17 : index
      %c0_67 = arith.constant 0 : index
      %139 = vector.load %arg3[%c17, %c0_67] : memref<24x32xf32, #tpu.memory_space<vmem>>, vector<1x32xf32>
      %cst_68 = arith.constant dense<0.000000e+00> : vector<16xf32>
      %140 = vector.multi_reduction <add>, %137, %cst_68 [1] : vector<16x32xf32> to vector<16xf32>
      %141 = vector.shape_cast %140 : vector<16xf32> to vector<16x1xf32>
      %cst_69 = arith.constant 3.200000e+01 : f32
      %142 = vector.broadcast %cst_69 : f32 to vector<16x1xf32>
      %143 = arith.divf %141, %142 : vector<16x1xf32>
      %144 = vector.broadcast %143 : vector<16x1xf32> to vector<16x32xf32>
      %145 = arith.subf %137, %144 : vector<16x32xf32>
      %146 = arith.mulf %145, %145 : vector<16x32xf32>
      %cst_70 = arith.constant dense<0.000000e+00> : vector<16xf32>
      %147 = vector.multi_reduction <add>, %146, %cst_70 [1] : vector<16x32xf32> to vector<16xf32>
      %148 = vector.shape_cast %147 : vector<16xf32> to vector<16x1xf32>
      %cst_71 = arith.constant 3.200000e+01 : f32
      %149 = vector.broadcast %cst_71 : f32 to vector<16x1xf32>
      %150 = arith.divf %148, %149 : vector<16x1xf32>
      %151 = vector.broadcast %143 : vector<16x1xf32> to vector<16x32xf32>
      %152 = arith.subf %137, %151 : vector<16x32xf32>
      %cst_72 = arith.constant 9.99999974E-6 : f32
      %153 = vector.broadcast %cst_72 : f32 to vector<16x1xf32>
      %154 = arith.addf %150, %153 : vector<16x1xf32>
      %155 = math.rsqrt %154 : vector<16x1xf32>
      %156 = vector.broadcast %155 : vector<16x1xf32> to vector<16x32xf32>
      %157 = arith.mulf %152, %156 : vector<16x32xf32>
      %158 = vector.broadcast %138 : vector<1x32xf32> to vector<16x32xf32>
      %159 = arith.mulf %157, %158 : vector<16x32xf32>
      %160 = vector.broadcast %139 : vector<1x32xf32> to vector<16x32xf32>
      %161 = arith.addf %159, %160 : vector<16x32xf32>
      %c0_73 = arith.constant 0 : index
      %c0_74 = arith.constant 0 : index
      %162 = vector.load %arg10[%c0_73, %c0_74] : memref<16x32xf32, #tpu.memory_space<vmem>>, vector<16x32xf32>
      tpu.vector_store %arg10[%c0_73, %c0_74], %161 {strides = array<i32>} : memref<16x32xf32, #tpu.memory_space<vmem>>, vector<16x32xf32>,
    } else {
    }
    %c0 = arith.constant 0 : index
    %c0_1 = arith.constant 0 : index
    %c0_2 = arith.constant 0 : index
    %3 = vector.load %arg8[%c0, %c0_1, %c0_2] : memref<1x8x128xf32, #tpu.memory_space<vmem>>, vector<1x1x32xf32>
    %4 = vector.shape_cast %3 : vector<1x1x32xf32> to vector<1x32xf32>
    %c0_3 = arith.constant 0 : index
    %c1 = arith.constant 1 : index
    %c0_4 = arith.constant 0 : index
    %5 = vector.load %arg8[%c0_3, %c1, %c0_4] : memref<1x8x128xf32, #tpu.memory_space<vmem>>, vector<1x1x32xf32>
    %6 = vector.shape_cast %5 : vector<1x1x32xf32> to vector<1x32xf32>
    %c0_5 = arith.constant 0 : index
    %c2 = arith.constant 2 : index
    %c0_6 = arith.constant 0 : index
    %7 = vector.load %arg8[%c0_5, %c2, %c0_6] : memref<1x8x128xf32, #tpu.memory_space<vmem>>, vector<1x1x96xf32>
    %8 = vector.shape_cast %7 : vector<1x1x96xf32> to vector<1x96xf32>
    %c0_7 = arith.constant 0 : index
    %c3 = arith.constant 3 : index
    %c0_8 = arith.constant 0 : index
    %9 = vector.load %arg8[%c0_7, %c3, %c0_8] : memref<1x8x128xf32, #tpu.memory_space<vmem>>, vector<1x1x32xf32>
    %10 = vector.shape_cast %9 : vector<1x1x32xf32> to vector<1x32xf32>
    %c0_9 = arith.constant 0 : index
    %c4 = arith.constant 4 : index
    %c0_10 = arith.constant 0 : index
    %11 = vector.load %arg8[%c0_9, %c4, %c0_10] : memref<1x8x128xf32, #tpu.memory_space<vmem>>, vector<1x1x32xf32>
    %12 = vector.shape_cast %11 : vector<1x1x32xf32> to vector<1x32xf32>
    %c0_11 = arith.constant 0 : index
    %c5 = arith.constant 5 : index
    %c0_12 = arith.constant 0 : index
    %13 = vector.load %arg8[%c0_11, %c5, %c0_12] : memref<1x8x128xf32, #tpu.memory_space<vmem>>, vector<1x1x32xf32>
    %14 = vector.shape_cast %13 : vector<1x1x32xf32> to vector<1x32xf32>
    %c0_13 = arith.constant 0 : index
    %c6 = arith.constant 6 : index
    %c0_14 = arith.constant 0 : index
    %15 = vector.load %arg8[%c0_13, %c6, %c0_14] : memref<1x8x128xf32, #tpu.memory_space<vmem>>, vector<1x1x128xf32>
    %16 = vector.shape_cast %15 : vector<1x1x128xf32> to vector<1x128xf32>
    %c0_15 = arith.constant 0 : index
    %c7 = arith.constant 7 : index
    %c0_16 = arith.constant 0 : index
    %17 = vector.load %arg8[%c0_15, %c7, %c0_16] : memref<1x8x128xf32, #tpu.memory_space<vmem>>, vector<1x1x32xf32>
    %18 = vector.shape_cast %17 : vector<1x1x32xf32> to vector<1x32xf32>
    %c0_17 = arith.constant 0 : index
    %c0_18 = arith.constant 0 : index
    %19 = vector.load %arg10[%c0_17, %c0_18] : memref<16x32xf32, #tpu.memory_space<vmem>>, vector<16x32xf32>
    %cst = arith.constant dense<0.000000e+00> : vector<16xf32>
    %20 = vector.multi_reduction <add>, %19, %cst [1] : vector<16x32xf32> to vector<16xf32>
    %21 = vector.shape_cast %20 : vector<16xf32> to vector<16x1xf32>
    %cst_19 = arith.constant 3.200000e+01 : f32
    %22 = vector.broadcast %cst_19 : f32 to vector<16x1xf32>
    %23 = arith.divf %21, %22 : vector<16x1xf32>
    %24 = vector.broadcast %23 : vector<16x1xf32> to vector<16x32xf32>
    %25 = arith.subf %19, %24 : vector<16x32xf32>
    %26 = arith.mulf %25, %25 : vector<16x32xf32>
    %cst_20 = arith.constant dense<0.000000e+00> : vector<16xf32>
    %27 = vector.multi_reduction <add>, %26, %cst_20 [1] : vector<16x32xf32> to vector<16xf32>
    %28 = vector.shape_cast %27 : vector<16xf32> to vector<16x1xf32>
    %cst_21 = arith.constant 3.200000e+01 : f32
    %29 = vector.broadcast %cst_21 : f32 to vector<16x1xf32>
    %30 = arith.divf %28, %29 : vector<16x1xf32>
    %31 = vector.broadcast %23 : vector<16x1xf32> to vector<16x32xf32>
    %32 = arith.subf %19, %31 : vector<16x32xf32>
    %cst_22 = arith.constant 9.99999974E-6 : f32
    %33 = vector.broadcast %cst_22 : f32 to vector<16x1xf32>
    %34 = arith.addf %30, %33 : vector<16x1xf32>
    %35 = math.rsqrt %34 : vector<16x1xf32>
    %36 = vector.broadcast %35 : vector<16x1xf32> to vector<16x32xf32>
    %37 = arith.mulf %32, %36 : vector<16x32xf32>
    %38 = vector.broadcast %4 : vector<1x32xf32> to vector<16x32xf32>
    %39 = arith.mulf %37, %38 : vector<16x32xf32>
    %40 = vector.broadcast %6 : vector<1x32xf32> to vector<16x32xf32>
    %41 = arith.addf %39, %40 : vector<16x32xf32>
    %c0_23 = arith.constant 0 : index
    %c0_24 = arith.constant 0 : index
    %c0_25 = arith.constant 0 : index
    %42 = vector.load %arg6[%c0_23, %c0_24, %c0_25] : memref<1x32x256xf32, #tpu.memory_space<vmem>>, vector<1x32x96xf32>
    %43 = vector.shape_cast %42 : vector<1x32x96xf32> to vector<32x96xf32>
    %cst_26 = arith.constant dense<0.000000e+00> : vector<16x96xf32>
    %44 = tpu.matmul %41, %43, %cst_26 {dimension_numbers = #tpu.dot_dimension_numbers<[1], [0], [0], [1], [0, 0, 1, 1], [], []>} : vector<16x32xf32>, vector<32x96xf32>, vector<16x96xf32> -> vector<16x96xf32>
    %45 = vector.broadcast %8 : vector<1x96xf32> to vector<16x96xf32>
    %46 = arith.addf %44, %45 : vector<16x96xf32>
    %47 = vector.extract_strided_slice %46 {offsets = [0, 0], sizes = [16, 16], strides = [1, 1]} : vector<16x96xf32> to vector<16x16xf32>
    %48 = vector.extract_strided_slice %46 {offsets = [0, 32], sizes = [16, 16], strides = [1, 1]} : vector<16x96xf32> to vector<16x16xf32>
    %49 = vector.extract_strided_slice %46 {offsets = [0, 64], sizes = [16, 16], strides = [1, 1]} : vector<16x96xf32> to vector<16x16xf32>
    %cst_27 = arith.constant dense<0.000000e+00> : vector<16x16xf32>
    %50 = tpu.matmul %47, %48, %cst_27 {dimension_numbers = #tpu.dot_dimension_numbers<[1], [1], [0], [0], [0, 0, 1, 0], [], []>} : vector<16x16xf32>, vector<16x16xf32>, vector<16x16xf32> -> vector<16x16xf32>
    %c0_28 = arith.constant 0 : index
    %c0_29 = arith.constant 0 : index
    %51 = vector.load %arg4[%c0_28, %c0_29] : memref<16x16xf32, #tpu.memory_space<vmem>>, vector<16x16xf32>
    %52 = arith.addf %50, %51 : vector<16x16xf32>
    %cst_30 = arith.constant dense<0xFF800000> : vector<16xf32>
    %53 = vector.multi_reduction <maximumf>, %52, %cst_30 [1] : vector<16x16xf32> to vector<16xf32>
    %54 = vector.shape_cast %53 : vector<16xf32> to vector<16x1xf32>
    %55 = vector.broadcast %54 : vector<16x1xf32> to vector<16x16xf32>
    %56 = arith.subf %52, %55 : vector<16x16xf32>
    %57 = math.exp %56 : vector<16x16xf32>
    %cst_31 = arith.constant dense<0.000000e+00> : vector<16xf32>
    %58 = vector.multi_reduction <add>, %57, %cst_31 [1] : vector<16x16xf32> to vector<16xf32>
    %59 = vector.shape_cast %58 : vector<16xf32> to vector<16x1xf32>
    %60 = tpu.reciprocal %59 {approx = true} : vector<16x1xf32> -> vector<16x1xf32>
    %61 = vector.broadcast %60 : vector<16x1xf32> to vector<16x16xf32>
    %62 = arith.mulf %57, %61 : vector<16x16xf32>
    %cst_32 = arith.constant dense<0.000000e+00> : vector<16x16xf32>
    %63 = tpu.matmul %62, %49, %cst_32 {dimension_numbers = #tpu.dot_dimension_numbers<[1], [0], [0], [1], [0, 0, 1, 1], [], []>} : vector<16x16xf32>, vector<16x16xf32>, vector<16x16xf32> -> vector<16x16xf32>
    %64 = vector.extract_strided_slice %46 {offsets = [0, 16], sizes = [16, 16], strides = [1, 1]} : vector<16x96xf32> to vector<16x16xf32>
    %65 = vector.extract_strided_slice %46 {offsets = [0, 48], sizes = [16, 16], strides = [1, 1]} : vector<16x96xf32> to vector<16x16xf32>
    %66 = vector.extract_strided_slice %46 {offsets = [0, 80], sizes = [16, 16], strides = [1, 1]} : vector<16x96xf32> to vector<16x16xf32>
    %cst_33 = arith.constant dense<0.000000e+00> : vector<16x16xf32>
    %67 = tpu.matmul %64, %65, %cst_33 {dimension_numbers = #tpu.dot_dimension_numbers<[1], [1], [0], [0], [0, 0, 1, 0], [], []>} : vector<16x16xf32>, vector<16x16xf32>, vector<16x16xf32> -> vector<16x16xf32>
    %c0_34 = arith.constant 0 : index
    %c0_35 = arith.constant 0 : index
    %68 = vector.load %arg4[%c0_34, %c0_35] : memref<16x16xf32, #tpu.memory_space<vmem>>, vector<16x16xf32>
    %69 = arith.addf %67, %68 : vector<16x16xf32>
    %cst_36 = arith.constant dense<0xFF800000> : vector<16xf32>
    %70 = vector.multi_reduction <maximumf>, %69, %cst_36 [1] : vector<16x16xf32> to vector<16xf32>
    %71 = vector.shape_cast %70 : vector<16xf32> to vector<16x1xf32>
    %72 = vector.broadcast %71 : vector<16x1xf32> to vector<16x16xf32>
    %73 = arith.subf %69, %72 : vector<16x16xf32>
    %74 = math.exp %73 : vector<16x16xf32>
    %cst_37 = arith.constant dense<0.000000e+00> : vector<16xf32>
    %75 = vector.multi_reduction <add>, %74, %cst_37 [1] : vector<16x16xf32> to vector<16xf32>
    %76 = vector.shape_cast %75 : vector<16xf32> to vector<16x1xf32>
    %77 = tpu.reciprocal %76 {approx = true} : vector<16x1xf32> -> vector<16x1xf32>
    %78 = vector.broadcast %77 : vector<16x1xf32> to vector<16x16xf32>
    %79 = arith.mulf %74, %78 : vector<16x16xf32>
    %cst_38 = arith.constant dense<0.000000e+00> : vector<16x16xf32>
    %80 = tpu.matmul %79, %66, %cst_38 {dimension_numbers = #tpu.dot_dimension_numbers<[1], [0], [0], [1], [0, 0, 1, 1], [], []>} : vector<16x16xf32>, vector<16x16xf32>, vector<16x16xf32> -> vector<16x16xf32>
    %81 = tpu.concatenate %63, %80 in 1 : vector<16x16xf32>, vector<16x16xf32> -> vector<16x32xf32>
    %c0_39 = arith.constant 0 : index
    %c0_40 = arith.constant 0 : index
    %c96 = arith.constant 96 : index
    %82 = vector.load %arg6[%c0_39, %c0_40, %c96] : memref<1x32x256xf32, #tpu.memory_space<vmem>>, vector<1x32x32xf32>
    %83 = vector.shape_cast %82 : vector<1x32x32xf32> to vector<32x32xf32>
    %cst_41 = arith.constant dense<0.000000e+00> : vector<16x32xf32>
    %84 = tpu.matmul %81, %83, %cst_41 {dimension_numbers = #tpu.dot_dimension_numbers<[1], [0], [0], [1], [0, 0, 1, 1], [], []>} : vector<16x32xf32>, vector<32x32xf32>, vector<16x32xf32> -> vector<16x32xf32>
    %85 = vector.broadcast %10 : vector<1x32xf32> to vector<16x32xf32>
    %86 = arith.addf %84, %85 : vector<16x32xf32>
    %87 = arith.addf %19, %86 : vector<16x32xf32>
    %cst_42 = arith.constant dense<0.000000e+00> : vector<16xf32>
    %88 = vector.multi_reduction <add>, %87, %cst_42 [1] : vector<16x32xf32> to vector<16xf32>
    %89 = vector.shape_cast %88 : vector<16xf32> to vector<16x1xf32>
    %cst_43 = arith.constant 3.200000e+01 : f32
    %90 = vector.broadcast %cst_43 : f32 to vector<16x1xf32>
    %91 = arith.divf %89, %90 : vector<16x1xf32>
    %92 = vector.broadcast %91 : vector<16x1xf32> to vector<16x32xf32>
    %93 = arith.subf %87, %92 : vector<16x32xf32>
    %94 = arith.mulf %93, %93 : vector<16x32xf32>
    %cst_44 = arith.constant dense<0.000000e+00> : vector<16xf32>
    %95 = vector.multi_reduction <add>, %94, %cst_44 [1] : vector<16x32xf32> to vector<16xf32>
    %96 = vector.shape_cast %95 : vector<16xf32> to vector<16x1xf32>
    %cst_45 = arith.constant 3.200000e+01 : f32
    %97 = vector.broadcast %cst_45 : f32 to vector<16x1xf32>
    %98 = arith.divf %96, %97 : vector<16x1xf32>
    %99 = vector.broadcast %91 : vector<16x1xf32> to vector<16x32xf32>
    %100 = arith.subf %87, %99 : vector<16x32xf32>
    %cst_46 = arith.constant 9.99999974E-6 : f32
    %101 = vector.broadcast %cst_46 : f32 to vector<16x1xf32>
    %102 = arith.addf %98, %101 : vector<16x1xf32>
    %103 = math.rsqrt %102 : vector<16x1xf32>
    %104 = vector.broadcast %103 : vector<16x1xf32> to vector<16x32xf32>
    %105 = arith.mulf %100, %104 : vector<16x32xf32>
    %106 = vector.broadcast %12 : vector<1x32xf32> to vector<16x32xf32>
    %107 = arith.mulf %105, %106 : vector<16x32xf32>
    %108 = vector.broadcast %14 : vector<1x32xf32> to vector<16x32xf32>
    %109 = arith.addf %107, %108 : vector<16x32xf32>
    %c0_47 = arith.constant 0 : index
    %c0_48 = arith.constant 0 : index
    %c128 = arith.constant 128 : index
    %110 = vector.load %arg6[%c0_47, %c0_48, %c128] : memref<1x32x256xf32, #tpu.memory_space<vmem>>, vector<1x32x128xf32>
    %111 = vector.shape_cast %110 : vector<1x32x128xf32> to vector<32x128xf32>
    %cst_49 = arith.constant dense<0.000000e+00> : vector<16x128xf32>
    %112 = tpu.matmul %109, %111, %cst_49 {dimension_numbers = #tpu.dot_dimension_numbers<[1], [0], [0], [1], [0, 0, 1, 1], [], []>} : vector<16x32xf32>, vector<32x128xf32>, vector<16x128xf32> -> vector<16x128xf32>
    %113 = vector.broadcast %16 : vector<1x128xf32> to vector<16x128xf32>
    %114 = arith.addf %112, %113 : vector<16x128xf32>
    %cst_50 = arith.constant 1.702000e+00 : f32
    %115 = vector.broadcast %cst_50 : f32 to vector<16x128xf32>
    %116 = arith.mulf %115, %114 : vector<16x128xf32>
    %117 = arith.negf %116 : vector<16x128xf32>
    %118 = math.exp %117 : vector<16x128xf32>
    %cst_51 = arith.constant 1.000000e+00 : f32
    %119 = vector.broadcast %cst_51 : f32 to vector<16x128xf32>
    %120 = arith.addf %119, %118 : vector<16x128xf32>
    %121 = arith.divf %119, %120 : vector<16x128xf32>
    %122 = arith.mulf %114, %121 : vector<16x128xf32>
    %c0_52 = arith.constant 0 : index
    %c0_53 = arith.constant 0 : index
    %c0_54 = arith.constant 0 : index
    %123 = vector.load %arg7[%c0_52, %c0_53, %c0_54] : memref<1x128x32xf32, #tpu.memory_space<vmem>>, vector<1x128x32xf32>
    %124 = vector.shape_cast %123 : vector<1x128x32xf32> to vector<128x32xf32>
    %cst_55 = arith.constant dense<0.000000e+00> : vector<16x32xf32>
    %125 = tpu.matmul %122, %124, %cst_55 {dimension_numbers = #tpu.dot_dimension_numbers<[1], [0], [0], [1], [0, 0, 1, 1], [], []>} : vector<16x128xf32>, vector<128x32xf32>, vector<16x32xf32> -> vector<16x32xf32>
    %126 = vector.broadcast %18 : vector<1x32xf32> to vector<16x32xf32>
    %127 = arith.addf %125, %126 : vector<16x32xf32>
    %128 = arith.addf %87, %127 : vector<16x32xf32>
    %c0_56 = arith.constant 0 : index
    %c0_57 = arith.constant 0 : index
    %129 = vector.load %arg10[%c0_56, %c0_57] : memref<16x32xf32, #tpu.memory_space<vmem>>, vector<16x32xf32>
    tpu.vector_store %arg10[%c0_56, %c0_57], %128 {strides = array<i32>} : memref<16x32xf32, #tpu.memory_space<vmem>>, vector<16x32xf32>,
    %c1_i32 = arith.constant 1 : i32
    %130 = arith.cmpi eq, %arg0, %c1_i32 : i32
    %131 = arith.extui %130 : i1 to i32
    %c0_i32_58 = arith.constant 0 : i32
    %132 = arith.cmpi ne, %131, %c0_i32_58 : i32
    scf.if %132 {
      %c0_59 = arith.constant 0 : index
      %c0_60 = arith.constant 0 : index
      %133 = vector.load %arg5[%c0_59, %c0_60] : memref<2x16xf32, #tpu.memory_space<vmem>>, vector<2x16xf32>
      %cst_61 = arith.constant dense<0.000000e+00> : vector<2x32xf32>
      %134 = tpu.matmul %133, %128, %cst_61 {dimension_numbers = #tpu.dot_dimension_numbers<[1], [0], [0], [1], [0, 0, 1, 1], [], []>} : vector<2x16xf32>, vector<16x32xf32>, vector<2x32xf32> -> vector<2x32xf32>
      %c0_62 = arith.constant 0 : index
      %c0_63 = arith.constant 0 : index
      %135 = vector.load %arg9[%c0_62, %c0_63] : memref<2x32xf32, #tpu.memory_space<vmem>>, vector<2x32xf32>
      tpu.vector_store %arg9[%c0_62, %c0_63], %134 {strides = array<i32>} : memref<2x32xf32, #tpu.memory_space<vmem>>, vector<2x32xf32>,
    } else {
    }
    return
  }
  func.func @transform_0(%arg0: i32) -> (i32, i32) {
    %c0_i32 = arith.constant 0 : i32
    %c0_i32_0 = arith.constant 0 : i32
    %c0_i32_1 = arith.constant 0 : i32
    return %c0_i32, %c0_i32_0 : i32, i32
  }
  func.func @transform_1(%arg0: i32) -> (i32, i32) {
    %c0_i32 = arith.constant 0 : i32
    %c0_i32_0 = arith.constant 0 : i32
    %c0_i32_1 = arith.constant 0 : i32
    return %c0_i32, %c0_i32_0 : i32, i32
  }
  func.func @transform_2(%arg0: i32) -> (i32, i32) {
    %c0_i32 = arith.constant 0 : i32
    %c0_i32_0 = arith.constant 0 : i32
    %c0_i32_1 = arith.constant 0 : i32
    return %c0_i32, %c0_i32_0 : i32, i32
  }
  func.func @transform_3(%arg0: i32) -> (i32, i32) {
    %c0_i32 = arith.constant 0 : i32
    %c0_i32_0 = arith.constant 0 : i32
    %c0_i32_1 = arith.constant 0 : i32
    return %c0_i32, %c0_i32_0 : i32, i32
  }
  func.func @transform_4(%arg0: i32) -> (i32, i32) {
    %c0_i32 = arith.constant 0 : i32
    %c0_i32_0 = arith.constant 0 : i32
    %c0_i32_1 = arith.constant 0 : i32
    return %c0_i32, %c0_i32_0 : i32, i32
  }
  func.func @transform_5(%arg0: i32) -> (i32, i32, i32) {
    %c0_i32 = arith.constant 0 : i32
    %c0_i32_0 = arith.constant 0 : i32
    %c0_i32_1 = arith.constant 0 : i32
    return %arg0, %c0_i32, %c0_i32_0 : i32, i32, i32
  }
  func.func @transform_6(%arg0: i32) -> (i32, i32, i32) {
    %c0_i32 = arith.constant 0 : i32
    %c0_i32_0 = arith.constant 0 : i32
    %c0_i32_1 = arith.constant 0 : i32
    return %arg0, %c0_i32, %c0_i32_0 : i32, i32, i32
  }
  func.func @transform_7(%arg0: i32) -> (i32, i32, i32) {
    %c0_i32 = arith.constant 0 : i32
    %c0_i32_0 = arith.constant 0 : i32
    %c0_i32_1 = arith.constant 0 : i32
    return %arg0, %c0_i32, %c0_i32_0 : i32, i32, i32
  }
  func.func @transform_8(%arg0: i32) -> (i32, i32) {
    %c0_i32 = arith.constant 0 : i32
    %c0_i32_0 = arith.constant 0 : i32
    %c0_i32_1 = arith.constant 0 : i32
    return %c0_i32, %c0_i32_0 : i32, i32
  }
}

</mosaic_0001>

<bundles_post_ra>
// kernel: image_intent_encoder.1
= control target key start
LH: loop header
LB: loop body
LE: loop exit
PB: predicated region body
PF: predicated region fallthrough
CT: control target
= control target key end

     0   :  { %13 = vsyncpa [#allocation4], 0  ;;  %s1943_s27 = smov 0   ;;  %s2277_s0 = inlined_call_operand.vmem [shape: f32[16,192], index: 0, kind: input, shape index: {}]   ;;  %s2278_s1 = inlined_call_operand.vmem [shape: f32[192,32], index: 1, kind: input, shape index: {}]   ;;  %s2279_s2 = inlined_call_operand.vmem [shape: f32[24,32], index: 2, kind: input, shape index: {}]   ;;  %s2280_s3 = inlined_call_operand.vmem [shape: f32[16,16], index: 3, kind: input, shape index: {}]   ;;  %s2281_s4 = inlined_call_operand.vmem [shape: f32[2,16], index: 4, kind: input, shape index: {}]   ;;  %s2282_s5 = inlined_call_operand.vmem [shape: f32[2,32,256], index: 5, kind: input, shape index: {}]   ;;  %s2283_s6 = inlined_call_operand.vmem [shape: f32[2,128,32], index: 6, kind: input, shape index: {}]   ;;  %s2284_s7 = inlined_call_operand.vmem [shape: f32[2,8,128], index: 7, kind: input, shape index: {}]   ;;  %s2285_s8 = inlined_call_operand.hbm [shape: f32[2,32], index: 8, kind: output, shape index: {}]  }
   0x1 LB: > { %s1949_s28 = sadd.s32 4294967295, %s1885_s27   ;;  %p1537_p0 = scmp.ge.s32.totalorder %s1885_s27, 1  ;;  %s1885_s27 = sphi %s1943_s27, %s19_s27  }
   0x2   : > { %p277_p1 = scmp.lt.s32.totalorder %s1885_s27, 3 }
   0x4   : > { %p278_p2 = pnand %p1537_p0, %p277_p1 }
   0x5   : > { %p315_p3 = scmp.lt.s32.totalorder (!%p278_p2), %s1949_s28, 1  ;;  %p1543_p4 = scmp.ne.s32.totalorder (!%p278_p2), %s1949_s28, 0 }
   0x6   : > { %281 = sbr.rel (%p278_p2) target bundleno = 3203 (0xc83), region = 52 }
   0xb   : > { %s316_s29 = scalar_select %p315_p3, %s1949_s28, 1 }
   0xc   : > { %332 = sbr.rel (%p1543_p4) target bundleno = 574 (0x23e), region = 56 }
   0xd   : > { %s1582_s30 = sshll.u32 %s316_s29, 6  ;;  %s1583_s9 = sshll.u32 %s316_s29, 7 }
   0xe   : > { %s1958_s12 = scalar_lea.vmem %s2282_s5, %s1582_s30  ;;  %s1963_s15 = scalar_lea.vmem %s2283_s6, %s1583_s9 }
   0xf   : > { %s1542_s16 = sshll.u32 %s316_s29, 3 }
  0x10   : > { %s1968_s19 = scalar_lea.vmem %s2284_s7, %s1542_s16 }
  0x11   : > { %v352_v0 = vld [vmem:[%s2278_s1 + $0x78] sm:$0xff]  ;;  %v1887_v1 = vmov 0.0   ;;  %v351_v2 = vld [vmem:[%s2278_s1 + $0x70] sm:$0xff]  ;;  %v350_v3 = vld [vmem:[%s2278_s1 + $0x68] sm:$0xff]  ;;  %vm363_vm0 = vcmask 523264   ;;  %vm447_vm1 = vcmask 261120  }
  0x12   : > { %370 = vmatprep.subr.mxu0 %v1887_v1  ;;  %1742 = vmatprep.subr.mxu1 %v1887_v1  ;;  %v349_v4 = vld [vmem:[%s2278_s1 + $0x60] sm:$0xff]  ;;  %v348_v5 = vld [vmem:[%s2278_s1 + $0x58] sm:$0xff]  ;;  %v347_v6 = vld [vmem:[%s2278_s1 + $0x50] sm:$0xff] }
  0x13   : > { %371 = vmatpush1.msra.mxu0 %v352_v0  ;;  %1766 = vmatpush1.msra.mxu1 %v352_v0  ;;  %v346_v7 = vld [vmem:[%s2278_s1 + $0x48] sm:$0xff]  ;;  %v345_v8 = vld [vmem:[%s2278_s1 + $0x40] sm:$0xff]  ;;  %v344_v9 = vld [vmem:[%s2278_s1 + $0x38] sm:$0xff] }
  0x14   : > { %372 = vmatprep.subr.mxu0 %v1887_v1  ;;  %1743 = vmatprep.subr.mxu1 %v1887_v1  ;;  %v343_v10 = vld [vmem:[%s2278_s1 + $0x30] sm:$0xff]  ;;  %v342_v11 = vld [vmem:[%s2278_s1 + $0x28] sm:$0xff]  ;;  %v341_v12 = vld [vmem:[%s2278_s1 + $0x20] sm:$0xff] }
  0x15   : > { %373 = vmatpush1.msra.mxu0 %v351_v2  ;;  %1767 = vmatpush1.msra.mxu1 %v351_v2  ;;  %v340_v13 = vld [vmem:[%s2278_s1 + $0x18] sm:$0xff]  ;;  %v339_v14 = vld [vmem:[%s2278_s1 + $0x10] sm:$0xff]  ;;  %v338_v15 = vld [vmem:[%s2278_s1 + $0x8] sm:$0xff] }
  0x16   : > { %374 = vmatprep.subr.mxu0 %v1887_v1  ;;  %1744 = vmatprep.subr.mxu1 %v1887_v1  ;;  %v337_v16 = vld [vmem:[%s2278_s1] sm:$0xff]  ;;  %v360_v17 = vld [vmem:[%s2278_s1 + $0xb8] sm:$0xff]  ;;  %v359_v18 = vld [vmem:[%s2278_s1 + $0xb0] sm:$0xff] }
  0x17   : > { %375 = vmatpush1.msra.mxu0 %v350_v3  ;;  %1768 = vmatpush1.msra.mxu1 %v350_v3  ;;  %v358_v19 = vld [vmem:[%s2278_s1 + $0xa8] sm:$0xff]  ;;  %v357_v20 = vld [vmem:[%s2278_s1 + $0xa0] sm:$0xff]  ;;  %v356_v21 = vld [vmem:[%s2278_s1 + $0x98] sm:$0xff] }
  0x18   : > { %376 = vmatprep.subr.mxu0 %v1887_v1  ;;  %1745 = vmatprep.subr.mxu1 %v1887_v1  ;;  %v355_v22 = vld [vmem:[%s2278_s1 + $0x90] sm:$0xff]  ;;  %v354_v23 = vld [vmem:[%s2278_s1 + $0x88] sm:$0xff]  ;;  %v353_v25 = vld [vmem:[%s2278_s1 + $0x80] sm:$0xff] }
  0x19   : > { %377 = vmatpush1.msra.mxu0 %v349_v4  ;;  %1769 = vmatpush1.msra.mxu1 %v349_v4  ;;  %v334_v24 = vld [vmem:[%s2277_s0 + $0x8] sm:$0xff]  ;;  %v333_v26 = vld [vmem:[%s2277_s0] sm:$0xff]  ;;  %v336_v27 = vld [vmem:[%s2277_s0 + $0x18] sm:$0xff] }
  0x1a   : > { %378 = vmatprep.subr.mxu0 %v1887_v1  ;;  %1746 = vmatprep.subr.mxu1 %v1887_v1  ;;  %v335_v28 = vld [vmem:[%s2277_s0 + $0x10] sm:$0xff]  ;;  %v361_v29 = vld [vmem:[%s2279_s2] sm:$0xff]  ;;  %v362_v31 = vld [vmem:[%s2279_s2 + $0x8] sm:$0xff] }
  0x1b   : > { %379 = vmatpush1.msra.mxu0 %v348_v5  ;;  %1770 = vmatpush1.msra.mxu1 %v348_v5  ;;  %v1546_v56 = vld [vmem:[%s2279_s2 + $0x10] ss:$0 sm:$0xff]  ;;  %v1547_v58 = vld [vmem:[%s2279_s2 + $0x11] ss:$0 sm:$0xff] }
  0x1c   : > { %380 = vmatprep.subr.mxu0 %v1887_v1  ;;  %1747 = vmatprep.subr.mxu1 %v1887_v1 }
  0x1d   : > { %381 = vmatpush1.msra.mxu0 %v347_v6  ;;  %1771 = vmatpush1.msra.mxu1 %v347_v6 }
  0x1e   : > { %382 = vmatprep.subr.mxu0 %v1887_v1  ;;  %1748 = vmatprep.subr.mxu1 %v1887_v1 }
  0x1f   : > { %383 = vmatpush1.msra.mxu0 %v346_v7  ;;  %1772 = vmatpush1.msra.mxu1 %v346_v7 }
  0x20   : > { %384 = vmatprep.subr.mxu0 %v1887_v1  ;;  %1749 = vmatprep.subr.mxu1 %v1887_v1 }
  0x21   : > { %385 = vmatpush1.msra.mxu0 %v345_v8  ;;  %1773 = vmatpush1.msra.mxu1 %v345_v8 }
  0x22   : > { %386 = vmatprep.subr.mxu0 %v1887_v1  ;;  %1750 = vmatprep.subr.mxu1 %v1887_v1 }
  0x23   : > { %387 = vmatpush1.msra.mxu0 %v344_v9  ;;  %1774 = vmatpush1.msra.mxu1 %v344_v9 }
  0x24   : > { %388 = vmatprep.subr.mxu0 %v1887_v1  ;;  %1751 = vmatprep.subr.mxu1 %v1887_v1 }
  0x25   : > { %389 = vmatpush1.msra.mxu0 %v343_v10  ;;  %1775 = vmatpush1.msra.mxu1 %v343_v10 }
  0x26   : > { %390 = vmatprep.subr.mxu0 %v1887_v1  ;;  %1752 = vmatprep.subr.mxu1 %v1887_v1 }
  0x27   : > { %391 = vmatpush1.msra.mxu0 %v342_v11  ;;  %1776 = vmatpush1.msra.mxu1 %v342_v11 }
  0x28   : > { %392 = vmatprep.subr.mxu0 %v1887_v1  ;;  %1753 = vmatprep.subr.mxu1 %v1887_v1 }
  0x29   : > { %393 = vmatpush1.msra.mxu0 %v341_v12  ;;  %1777 = vmatpush1.msra.mxu1 %v341_v12 }
  0x2a   : > { %394 = vmatprep.subr.mxu0 %v1887_v1  ;;  %1754 = vmatprep.subr.mxu1 %v1887_v1 }
  0x2b   : > { %395 = vmatpush1.msra.mxu0 %v340_v13  ;;  %1778 = vmatpush1.msra.mxu1 %v340_v13 }
  0x2c   : > { %396 = vmatprep.subr.mxu0 %v1887_v1  ;;  %1755 = vmatprep.subr.mxu1 %v1887_v1 }
  0x2d   : > { %397 = vmatpush1.msra.mxu0 %v339_v14  ;;  %1779 = vmatpush1.msra.mxu1 %v339_v14 }
  0x2e   : > { %398 = vmatprep.subr.mxu0 %v1887_v1  ;;  %1756 = vmatprep.subr.mxu1 %v1887_v1 }
  0x2f   : > { %399 = vmatpush1.msra.mxu0 %v338_v15  ;;  %1780 = vmatpush1.msra.mxu1 %v338_v15 }
  0x30   : > { %400 = vmatprep.subr.mxu0 %v1887_v1  ;;  %1757 = vmatprep.subr.mxu1 %v1887_v1 }
  0x31   : > { %401 = vmatpush1.msra.mxu0 %v337_v16  ;;  %1781 = vmatpush1.msra.mxu1 %v337_v16 }
  0x32   : > { %418 = vmatprep.subr.mxu0 %v1887_v1  ;;  %1758 = vmatprep.subr.mxu1 %v1887_v1 }
  0x33   : > { %419 = vmatpush2.msra.mxu0 %v360_v17  ;;  %1782 = vmatpush2.msra.mxu1 %v360_v17 }
  0x34   : > { %420 = vmatprep.subr.mxu0 %v1887_v1  ;;  %1759 = vmatprep.subr.mxu1 %v1887_v1 }
  0x35   : > { %421 = vmatpush2.msra.mxu0 %v359_v18  ;;  %1783 = vmatpush2.msra.mxu1 %v359_v18 }
  0x36   : > { %422 = vmatprep.subr.mxu0 %v1887_v1  ;;  %1760 = vmatprep.subr.mxu1 %v1887_v1 }
  0x37   : > { %423 = vmatpush2.msra.mxu0 %v358_v19  ;;  %1784 = vmatpush2.msra.mxu1 %v358_v19 }
  0x38   : > { %424 = vmatprep.subr.mxu0 %v1887_v1  ;;  %1761 = vmatprep.subr.mxu1 %v1887_v1 }
  0x39   : > { %425 = vmatpush2.msra.mxu0 %v357_v20  ;;  %1785 = vmatpush2.msra.mxu1 %v357_v20 }
  0x3a   : > { %426 = vmatprep.subr.mxu0 %v1887_v1  ;;  %1762 = vmatprep.subr.mxu1 %v1887_v1 }
  0x3b   : > { %427 = vmatpush2.msra.mxu0 %v356_v21  ;;  %1786 = vmatpush2.msra.mxu1 %v356_v21 }
  0x3c   : > { %428 = vmatprep.subr.mxu0 %v1887_v1  ;;  %1763 = vmatprep.subr.mxu1 %v1887_v1 }
  0x3d   : > { %429 = vmatpush2.msra.mxu0 %v355_v22  ;;  %1787 = vmatpush2.msra.mxu1 %v355_v22 }
  0x3e   : > { %430 = vmatprep.subr.mxu0 %v1887_v1  ;;  %1764 = vmatprep.subr.mxu1 %v1887_v1 }
  0x3f   : > { %431 = vmatpush2.msra.mxu0 %v354_v23  ;;  %1788 = vmatpush2.msra.mxu1 %v354_v23 }
  0x40   : > { %432 = vmatprep.subr.mxu0 %v1887_v1  ;;  %1544 = vmatprep.mubr.msk.f32.mxu0 %vm363_vm0, %v334_v24 }
  0x41   : > { %433 = vmatpush2.msra.mxu0 %v353_v25  ;;  %1765 = vmatprep.subr.mxu1 %v1887_v1 }
  0x42   : > { %435 = vmatmul.mubr.f32.vlgmr.msra.gmra.mxu0 %v333_v26  ;;  %1789 = vmatpush2.msra.mxu1 %v353_v25 }
  0x43   : > { %1545 = vmatprep.mubr.msk.f32.mxu1 %vm363_vm0, %v336_v27 }
  0x44   : > { %440 = vmatmul.mubr.f32.vlgmr.msra.gmra.mxu1 %v335_v28 }
 0x102   : > { %v436_v30 = vpop.f32.mrf.mxu0 }
 0x103   : > { %v437_v32 = vadd.f32 %v436_v30, %v361_v29 }
 0x104   : > { %v438_v33 = vpop.f32.mrf.mxu0  ;;  %v441_v34 = vpop.f32.mrf.mxu1 }
 0x105   : > { %v442_v35 = vadd.f32 %v441_v34, %v362_v31  ;;  %v448_v36 = vsel %vm447_vm1, %v437_v32, 0.0 }
 0x106   : > { %v443_v37 = vpop.f32.mrf.mxu1  ;;  %449 = vadd.xlane.f32.xlu0 %v448_v36 }
 0x107   : > { %v451_v38 = vsel %vm447_vm1, %v442_v35, 0.0 }
 0x10a   : > { %452 = vadd.xlane.f32.xlu0 %v451_v38 }
 0x18f   : > { %v450_v39 = vpop.xlane.xlu0 %449 }
 0x190   : > { %v455_v40 = vmul.f32 0.03125, %v450_v39 }
 0x192   : > { %v457_v41 = vsub.f32 %v437_v32, %v455_v40 }
 0x193   : > { %v453_v42 = vpop.xlane.xlu0 %452 }
 0x194   : > { %v456_v43 = vmul.f32 0.03125, %v453_v42  ;;  %v459_v44 = vmul.f32 %v457_v41, %v457_v41 }
 0x196   : > { %v458_v45 = vsub.f32 %v442_v35, %v456_v43  ;;  %v461_v46 = vsel %vm447_vm1, %v459_v44, 0.0 }
 0x197   : > { %462 = vadd.xlane.f32.xlu1 %v461_v46 }
 0x198   : > { %v460_v47 = vmul.f32 %v458_v45, %v458_v45 }
 0x19a   : > { %v464_v48 = vsel %vm447_vm1, %v460_v47, 0.0 }
 0x19b   : > { %465 = vadd.xlane.f32.xlu1 %v464_v48 }
 0x220   : > { %v463_v49 = vpop.xlane.xlu1 %462 }
 0x221   : > { %v467_v50 = vmul.f32 0.03125, %v463_v49 }
 0x223   : > { %v469_v51 = vadd.f32 1e-05, %v467_v50 }
 0x224   : > { %v466_v52 = vpop.xlane.xlu1 %465 }
 0x225   : > { %1815 = vrsqrt.f32 %v469_v51  ;;  %v468_v53 = vmul.f32 0.03125, %v466_v52 }
 0x227   : > { %v470_v54 = vadd.f32 1e-05, %v468_v53 }
 0x229   : > { %1817 = vrsqrt.f32 %v470_v54 }
 0x232   : > { %v1816_v55 = vpop.eup %1815 }
 0x233   : > { %v473_v57 = vmul.f32 %v1816_v55, %v457_v41 }
 0x235   : > { %v479_v59 = vmul.f32 %v1546_v56, %v473_v57 }
 0x236   : > { %v1818_v60 = vpop.eup %1817 }
 0x237   : > { %v485_v61 = vadd.f32 %v1547_v58, %v479_v59  ;;  %v474_v62 = vmul.f32 %v1818_v60, %v458_v45 }
 0x239   : > { %487 = vst.msk [vmem:[#allocation2] sm:$0xff] %vm447_vm1, %v485_v61  ;;  %v480_v63 = vmul.f32 %v1546_v56, %v474_v62 }
 0x23b   : > { %v486_v0 = vadd.f32 %v1547_v58, %v480_v63 }
 0x23d   : > { %488 = vst.msk [vmem:[#allocation2 + $0x8] sm:$0xff] %vm447_vm1, %v486_v0 }
 0x23e PF: > { %vm499_vm2 = vcmask 261120   ;;  %v2134_v15 = vld [vmem:[%s1958_s12 + $0x30] sm:$0xff]  ;;  %v2137_v16 = vld [vmem:[%s1958_s12 + $0x20] sm:$0xff]  ;;  %vm636_vm3 = vcmask 130048   ;;  %s1888_s14 = smov 96   ;;  %s1889_s16 = smov 112  }
 0x23f   : > { %1639 = vmatprep.subr.mxu1 %v2134_v15  ;;  %v2142_v17 = vld [vmem:[%s1958_s12 + $0x10] sm:$0xff]  ;;  %v2149_v18 = vld [vmem:[%s1958_s12] sm:$0xff]  ;;  %s1890_s17 = smov 80   ;;  %v629_v46 = vld [vmem:[%s2280_s3 + $0x8] sm:$0xff]  ;;  %s1891_s23 = smov 64  }
 0x240   : > { %v2121_v1 = vld [vmem:[#allocation2] sm:$0xff]  ;;  %1640 = vmatpush3.msra.mxu1 %v2134_v15  ;;  %s1892_s24 = smov 48   ;;  %s1893_s25 = smov 32  }
 0x241   : > { %v500_v3 = vsel %vm499_vm2, %v2121_v1, 0.0  ;;  %1641 = vmatprep.subr.mxu1 %v2137_v16  ;;  %v1548_v26 = vld [vmem:[%s1968_s19] ss:$0 sm:$0xff]  ;;  %v1549_v28 = vld [vmem:[%s1968_s19 + $0x1] ss:$0 sm:$0xff]  ;;  %s1894_s26 = smov 16  }
 0x242   : > { %501 = vadd.xlane.f32.xlu0 %v500_v3  ;;  %1642 = vmatpush3.msra.mxu1 %v2137_v16  ;;  %v1550_v35 = vld [vmem:[%s1968_s19 + $0x2] ss:$0 sm:$0xff]  ;;  %p1576_p5 = scmp.ne.s32.totalorder %s1949_s28, 1 }
 0x243   : > { %1643 = vmatprep.subr.mxu1 %v2142_v17  ;;  %v628_v48 = vld [vmem:[%s2280_s3] sm:$0xff] }
 0x244   : > { %v2123_v2 = vld [vmem:[#allocation2 + $0x8] sm:$0xff]  ;;  %1644 = vmatpush3.msra.mxu1 %v2142_v17 }
 0x245   : > { %v503_v4 = vsel %vm499_vm2, %v2123_v2, 0.0  ;;  %1645 = vmatprep.subr.mxu1 %v2149_v18 }
 0x246   : > { %504 = vadd.xlane.f32.xlu0 %v503_v4  ;;  %1646 = vmatpush3.msra.mxu1 %v2149_v18 }
 0x2cb   : > { %v502_v5 = vpop.xlane.xlu0 %501 }
 0x2cc   : > { %v507_v6 = vmul.f32 0.03125, %v502_v5 }
 0x2ce   : > { %v509_v7 = vsub.f32 %v2121_v1, %v507_v6 }
 0x2cf   : > { %v505_v8 = vpop.xlane.xlu0 %504 }
 0x2d0   : > { %v508_v9 = vmul.f32 0.03125, %v505_v8  ;;  %v511_v10 = vmul.f32 %v509_v7, %v509_v7 }
 0x2d2   : > { %v510_v11 = vsub.f32 %v2123_v2, %v508_v9  ;;  %v513_v12 = vsel %vm499_vm2, %v511_v10, 0.0 }
 0x2d3   : > { %514 = vadd.xlane.f32.xlu1 %v513_v12 }
 0x2d4   : > { %v512_v13 = vmul.f32 %v510_v11, %v510_v11 }
 0x2d6   : > { %v516_v14 = vsel %vm499_vm2, %v512_v13, 0.0 }
 0x2d7   : > { %517 = vadd.xlane.f32.xlu1 %v516_v14 }
 0x35c   : > { %v515_v19 = vpop.xlane.xlu1 %514 }
 0x35d   : > { %v519_v20 = vmul.f32 0.03125, %v515_v19 }
 0x35f   : > { %v521_v21 = vadd.f32 1e-05, %v519_v20 }
 0x360   : > { %v518_v22 = vpop.xlane.xlu1 %517 }
 0x361   : > { %1819 = vrsqrt.f32 %v521_v21  ;;  %v520_v23 = vmul.f32 0.03125, %v518_v22 }
 0x363   : > { %v522_v24 = vadd.f32 1e-05, %v520_v23 }
 0x365   : > { %1821 = vrsqrt.f32 %v522_v24 }
 0x36e   : > { %v1820_v25 = vpop.eup %1819 }
 0x36f   : > { %v525_v27 = vmul.f32 %v1820_v25, %v509_v7 }
 0x371   : > { %v531_v29 = vmul.f32 %v1548_v26, %v525_v27 }
 0x372   : > { %v1822_v30 = vpop.eup %1821 }
 0x373   : > { %v526_v31 = vmul.f32 %v1822_v30, %v510_v11  ;;  %v537_v32 = vadd.f32 %v1549_v28, %v531_v29 }
 0x375   : > { %v532_v33 = vmul.f32 %v1548_v26, %v526_v31  ;;  %1647 = vmatprep.mubr.msk.f32.mxu1 %vm499_vm2, %v537_v32 }
 0x377   : > { %v538_v34 = vadd.f32 %v1549_v28, %v532_v33 }
 0x379   : > { %1648 = vmatmul.mubr.msk.f32.vlgmr.msra.gmra.mxu1 %vm499_vm2, %v538_v34 }
 0x439   : > { %v1649_v36 = vpop.f32.mrf.mxu1 }
 0x43a   : > { %v2158_v37 = vadd.f32 %v1649_v36, %v1550_v35 }
 0x43b   : > { %v619_v38 = vpop.f32.mrf.mxu1 }
 0x43c   : > { %v2160_v39 = vadd.f32 %v1550_v35, %v619_v38  ;;  %634 = vrot.lane.b32.xlu0 %v2158_v37, %s1888_s14 }
 0x43e   : > { %632 = vrot.lane.b32.xlu1 %v2160_v39, %s1888_s14  ;;  %1654 = vmatprep.mubr.msk.f32.mxu1 %vm636_vm3, %v2160_v39 }
 0x440   : > { %829 = vrot.lane.b32.xlu0 %v2160_v39, %s1889_s16 }
 0x442   : > { %835 = vrot.lane.b32.xlu1 %v2158_v37, %s1890_s17 }
 0x446   : > { %833 = vrot.lane.b32.xlu1 %v2160_v39, %s1890_s17 }
 0x44a   : > { %831 = vrot.lane.b32.xlu1 %v2158_v37, %s1889_s16 }
 0x4ae   : > { %v635_v40 = vpop.permute.xlu0 %634 }
 0x4af   : > { %1650 = vmatprep.subr.msk.mxu1 %vm636_vm3, %v635_v40 }
 0x4b0   : > { %1651 = vmatpush3.xpose.msk.msra.mxu1 %vm636_vm3, %v635_v40  ;;  %v633_v41 = vpop.permute.xlu1 %632 }
 0x4b1   : > { %1652 = vmatprep.subr.msk.mxu1 %vm636_vm3, %v633_v41 }
 0x4b2   : > { %v830_v43 = vpop.permute.xlu0 %829 }
 0x4b4   : > { %1653 = vmatpush3.xpose.msk.msra.mxu1 %vm636_vm3, %v633_v41  ;;  %v836_v42 = vpop.permute.xlu1 %835 }
 0x4b5   : > { %1664 = vmatprep.subr.msk.mxu1 %vm636_vm3, %v836_v42 }
 0x4b7   : > { %1655 = vmatmul.mubr.msk.f32.vlgmr.msra.gmra.mxu1 %vm636_vm3, %v2158_v37 }
 0x4b8   : > { %v834_v44 = vpop.permute.xlu1 %833  ;;  %1665 = vmatpush3.xpose.msk.msra.mxu1 %vm636_vm3, %v836_v42  ;;  %1668 = vmatprep.mubr.msk.f32.mxu1 %vm636_vm3, %v830_v43 }
 0x4b9   : > { %1666 = vmatprep.subr.msk.mxu1 %vm636_vm3, %v834_v44 }
 0x4bc   : > { %1667 = vmatpush3.xpose.msk.msra.mxu1 %vm636_vm3, %v834_v44  ;;  %v832_v45 = vpop.permute.xlu1 %831 }
 0x4bf   : > { %1669 = vmatmul.mubr.msk.f32.vlgmr.msra.gmra.mxu1 %vm636_vm3, %v832_v45 }
 0x577   : > { %v1656_v47 = vpop.f32.mrf.mxu1 }
 0x578   : > { %v717_v49 = vadd.f32 %v1656_v47, %v629_v46 }
 0x579   : > { %v711_v50 = vpop.f32.mrf.mxu1 }
 0x57a   : > { %v712_v51 = vadd.f32 %v711_v50, %v628_v48  ;;  %v723_v52 = vsel %vm636_vm3, %v717_v49, -inf }
 0x57b   : > { %724 = vmax.xlane.f32.xlu1 %v723_v52 }
 0x57c   : > { %v720_v53 = vsel %vm636_vm3, %v712_v51, -inf }
 0x57d   : > { %721 = vmax.xlane.f32.xlu0 %v720_v53 }
 0x57f   : > { %v1670_v54 = vpop.f32.mrf.mxu1 }
 0x580   : > { %v917_v57 = vadd.f32 %v1670_v54, %v629_v46  ;;  %v1565_v46 = vld [vmem:[%s1968_s19 + $0x3] ss:$0 sm:$0xff] }
 0x581   : > { %v911_v55 = vpop.f32.mrf.mxu1 }
 0x582   : > { %v912_v56 = vadd.f32 %v911_v55, %v628_v48  ;;  %v923_v59 = vsel %vm636_vm3, %v917_v57, -inf }
 0x584   : > { %v920_v58 = vsel %vm636_vm3, %v912_v56, -inf }
 0x585   : > { %921 = vmax.xlane.f32.xlu0 %v920_v58 }
 0x589   : > { %924 = vmax.xlane.f32.xlu0 %v923_v59 }
 0x604   : > { %v725_v60 = vpop.xlane.xlu1 %724 }
 0x605   : > { %v727_v61 = vsub.f32 %v717_v49, %v725_v60 }
 0x606   : > { %v722_v62 = vpop.xlane.xlu0 %721 }
 0x607   : > { %v730_v63 = vmul.f32 1.442695, %v727_v61  ;;  %v726_v0 = vsub.f32 %v712_v51, %v722_v62 }
 0x609   : > { %1823 = vpow2.f32 %v730_v63  ;;  %v728_v3 = vmul.f32 1.442695, %v726_v0  ;;  %v1183_v63 = vld [vmem:[%s1958_s12 + $0x38] sm:$0xff]  ;;  %v1182_v0 = vld [vmem:[%s1958_s12 + $0x28] sm:$0xff] }
 0x60b   : > { %1825 = vpow2.f32 %v728_v3  ;;  %v1181_v3 = vld [vmem:[%s1958_s12 + $0x18] sm:$0xff] }
 0x60e   : > { %v922_v4 = vpop.xlane.xlu0 %921 }
 0x60f   : > { %v926_v5 = vsub.f32 %v912_v56, %v922_v4  ;;  %v1180_v4 = vld [vmem:[%s1958_s12 + $0x8] sm:$0xff] }
 0x611   : > { %v928_v6 = vmul.f32 1.442695, %v926_v5 }
 0x612   : > { %v925_v7 = vpop.xlane.xlu0 %924 }
 0x613   : > { %1827 = vpow2.f32 %v928_v6  ;;  %v927_v8 = vsub.f32 %v917_v57, %v925_v7 }
 0x615   : > { %v930_v9 = vmul.f32 1.442695, %v927_v8 }
 0x616   : > { %v1824_v10 = vpop.eup %1823 }
 0x617   : > { %1829 = vpow2.f32 %v930_v9  ;;  %v735_v11 = vsel %vm636_vm3, %v1824_v10, 0.0 }
 0x618   : > { %v1826_v12 = vpop.eup %1825  ;;  %736 = vadd.xlane.f32.xlu1 %v735_v11 }
 0x619   : > { %v732_v13 = vsel %vm636_vm3, %v1826_v12, 0.0 }
 0x61a   : > { %733 = vadd.xlane.f32.xlu0 %v732_v13 }
 0x620   : > { %v1828_v14 = vpop.eup %1827 }
 0x621   : > { %v932_v19 = vsel %vm636_vm3, %v1828_v14, 0.0 }
 0x622   : > { %933 = vadd.xlane.f32.xlu0 %v932_v19 }
 0x624   : > { %v1830_v20 = vpop.eup %1829 }
 0x625   : > { %v935_v21 = vsel %vm636_vm3, %v1830_v20, 0.0 }
 0x626   : > { %936 = vadd.xlane.f32.xlu1 %v935_v21 }
 0x637   : > { %742 = vrot.lane.b32.xlu1 %v2160_v39, %s1891_s23 }
 0x638   : > { %744 = vrot.lane.b32.xlu0 %v2158_v37, %s1891_s23 }
 0x63b   : > { %944 = vrot.lane.b32.xlu1 %v2158_v37, %s1892_s24 }
 0x63c   : > { %1053 = vrot.lane.b32.xlu0 %v2134_v15, %s1893_s25 }
 0x63f   : > { %942 = vrot.lane.b32.xlu1 %v2160_v39, %s1892_s24 }
 0x640   : > { %1049 = vrot.lane.b32.xlu0 %v2142_v17, %s1893_s25 }
 0x643   : > { %1051 = vrot.lane.b32.xlu1 %v2137_v16, %s1893_s25 }
 0x644   : > { %1047 = vrot.lane.b32.xlu0 %v2149_v18, %s1893_s25 }
 0x6a1   : > { %v737_v22 = vpop.xlane.xlu1 %736 }
 0x6a2   : > { %1831 = vrcp.f32 %v737_v22 }
 0x6a3   : > { %v734_v23 = vpop.xlane.xlu0 %733 }
 0x6a4   : > { %1833 = vrcp.f32 %v734_v23 }
 0x6ab   : > { %v934_v24 = vpop.xlane.xlu0 %933 }
 0x6ac   : > { %1835 = vrcp.f32 %v934_v24 }
 0x6af   : > { %v937_v25 = vpop.xlane.xlu1 %936  ;;  %v745_v26 = vpop.permute.xlu0 %744 }
 0x6b0   : > { %v1832_v27 = vpop.eup %1831  ;;  %1837 = vrcp.f32 %v937_v25  ;;  %1657 = vmatprep.subr.mxu0 %v745_v26  ;;  %v1300_v25 = vld [vmem:[%s1963_s15 + $0x78] sm:$0xff] }
 0x6b1   : > { %v1834_v28 = vpop.eup %1833  ;;  %1658 = vmatpush3.msra.mxu0 %v745_v26  ;;  %v741_v31 = vmul.f32 %v1832_v27, %v1824_v10  ;;  %v1299_v26 = vld [vmem:[%s1963_s15 + $0x70] sm:$0xff]  ;;  %v1298_v27 = vld [vmem:[%s1963_s15 + $0x68] sm:$0xff] }
 0x6b2   : > { %v740_v29 = vmul.f32 %v1834_v28, %v1826_v12  ;;  %v1568_v12 = vld [vmem:[%s1968_s19 + $0x4] ss:$0 sm:$0xff] }
 0x6b3   : > { %v743_v30 = vpop.permute.xlu1 %742  ;;  %v1054_v38 = vpop.permute.xlu0 %1053  ;;  %v1297_v28 = vld [vmem:[%s1963_s15 + $0x60] sm:$0xff] }
 0x6b4   : > { %1659 = vmatprep.subr.mxu0 %v743_v30  ;;  %1661 = vmatprep.mubr.msk.f32.mxu0 %vm636_vm3, %v740_v29  ;;  %v1296_v29 = vld [vmem:[%s1963_s15 + $0x58] sm:$0xff] }
 0x6b5   : > { %1660 = vmatpush3.msra.mxu0 %v743_v30  ;;  %1678 = vmatprep.subr.mxu1 %v1054_v38  ;;  %v1295_v30 = vld [vmem:[%s1963_s15 + $0x50] sm:$0xff] }
 0x6b6   : > { %1662 = vmatmul.mubr.msk.f32.vlgmr.msra.gmra.mxu0 %vm636_vm3, %v741_v31  ;;  %1679 = vmatpush3.msra.mxu1 %v1054_v38  ;;  %v1294_v31 = vld [vmem:[%s1963_s15 + $0x48] sm:$0xff]  ;;  %v1287_v38 = vld [vmem:[%s1963_s15 + $0x10] sm:$0xff] }
 0x6b7   : > { %v945_v32 = vpop.permute.xlu1 %944  ;;  %v1050_v40 = vpop.permute.xlu0 %1049 }
 0x6b8   : > { %1671 = vmatprep.subr.mxu0 %v945_v32 }
 0x6b9   : > { %v1836_v33 = vpop.eup %1835  ;;  %1672 = vmatpush3.msra.mxu0 %v945_v32  ;;  %v1293_v32 = vld [vmem:[%s1963_s15 + $0x40] sm:$0xff] }
 0x6ba   : > { %v940_v34 = vmul.f32 %v1836_v33, %v1828_v14  ;;  %v1569_v14 = vld [vmem:[%s1968_s19 + $0x5] ss:$0 sm:$0xff]  ;;  %v1292_v33 = vld [vmem:[%s1963_s15 + $0x38] sm:$0xff] }
 0x6bb   : > { %v943_v35 = vpop.permute.xlu1 %942  ;;  %v1048_v41 = vpop.permute.xlu0 %1047 }
 0x6bc   : > { %1673 = vmatprep.subr.mxu0 %v943_v35  ;;  %1675 = vmatprep.mubr.msk.f32.mxu0 %vm636_vm3, %v940_v34  ;;  %v1291_v34 = vld [vmem:[%s1963_s15 + $0x30] sm:$0xff] }
 0x6bd   : > { %v1838_v36 = vpop.eup %1837  ;;  %1674 = vmatpush3.msra.mxu0 %v943_v35  ;;  %v1290_v35 = vld [vmem:[%s1963_s15 + $0x28] sm:$0xff] }
 0x6be   : > { %v941_v37 = vmul.f32 %v1838_v36, %v1830_v20  ;;  %1700 = vmatprep.subr.mxu0 %v1300_v25  ;;  %v1289_v36 = vld [vmem:[%s1963_s15 + $0x20] sm:$0xff] }
 0x6bf   : > { %v1052_v39 = vpop.permute.xlu1 %1051 }
 0x6c0   : > { %1676 = vmatmul.mubr.msk.f32.vlgmr.msra.gmra.mxu0 %vm636_vm3, %v941_v37  ;;  %1680 = vmatprep.subr.mxu1 %v1052_v39  ;;  %v1288_v37 = vld [vmem:[%s1963_s15 + $0x18] sm:$0xff] }
 0x6c1   : > { %1681 = vmatpush3.msra.mxu1 %v1052_v39  ;;  %1701 = vmatpush3.msra.mxu0 %v1300_v25  ;;  %v1286_v39 = vld [vmem:[%s1963_s15 + $0x8] sm:$0xff] }
 0x6c2   : > { %1682 = vmatprep.subr.mxu1 %v1050_v40  ;;  %1702 = vmatprep.subr.mxu0 %v1299_v26 }
 0x6c3   : > { %1683 = vmatpush3.msra.mxu1 %v1050_v40  ;;  %1703 = vmatpush3.msra.mxu0 %v1299_v26  ;;  %v1285_v40 = vld [vmem:[%s1963_s15] sm:$0xff] }
 0x6c4   : > { %1684 = vmatprep.subr.mxu1 %v1048_v41  ;;  %1704 = vmatprep.subr.mxu0 %v1298_v27 }
 0x6c5   : > { %1685 = vmatpush3.msra.mxu1 %v1048_v41  ;;  %1705 = vmatpush3.msra.mxu0 %v1298_v27  ;;  %v1570_v41 = vld [vmem:[%s1968_s19 + $0x6] ss:$0 sm:$0xff] }
 0x6c6   : > { %1689 = vmatprep.subr.mxu1 %v1183_v63  ;;  %1706 = vmatprep.subr.mxu0 %v1297_v28 }
 0x6c7   : > { %1707 = vmatpush3.msra.mxu0 %v1297_v28 }
 0x6c8   : > { %1708 = vmatprep.subr.mxu0 %v1296_v29 }
 0x6c9   : > { %1709 = vmatpush3.msra.mxu0 %v1296_v29 }
 0x6ca   : > { %1710 = vmatprep.subr.mxu0 %v1295_v30 }
 0x6cb   : > { %1711 = vmatpush3.msra.mxu0 %v1295_v30 }
 0x6cc   : > { %1712 = vmatprep.subr.mxu0 %v1294_v31 }
 0x6cd   : > { %1713 = vmatpush3.msra.mxu0 %v1294_v31 }
 0x6ce   : > { %1714 = vmatprep.subr.mxu0 %v1293_v32 }
 0x6cf   : > { %1715 = vmatpush3.msra.mxu0 %v1293_v32 }
 0x6d0   : > { %1716 = vmatprep.subr.mxu0 %v1292_v33 }
 0x6d1   : > { %1717 = vmatpush3.msra.mxu0 %v1292_v33 }
 0x6d2   : > { %1718 = vmatprep.subr.mxu0 %v1291_v34 }
 0x6d3   : > { %1719 = vmatpush3.msra.mxu0 %v1291_v34 }
 0x6d4   : > { %1720 = vmatprep.subr.mxu0 %v1290_v35 }
 0x6d5   : > { %1721 = vmatpush3.msra.mxu0 %v1290_v35 }
 0x6d6   : > { %1722 = vmatprep.subr.mxu0 %v1289_v36 }
 0x6d7   : > { %1723 = vmatpush3.msra.mxu0 %v1289_v36 }
 0x6d8   : > { %1724 = vmatprep.subr.mxu0 %v1288_v37 }
 0x6d9   : > { %1725 = vmatpush3.msra.mxu0 %v1288_v37 }
 0x6da   : > { %1726 = vmatprep.subr.mxu0 %v1287_v38 }
 0x6db   : > { %1727 = vmatpush3.msra.mxu0 %v1287_v38 }
 0x6dc   : > { %1728 = vmatprep.subr.mxu0 %v1286_v39 }
 0x6dd   : > { %1729 = vmatpush3.msra.mxu0 %v1286_v39 }
 0x6de   : > { %1730 = vmatprep.subr.mxu0 %v1285_v40 }
 0x6df   : > { %1731 = vmatpush3.msra.mxu0 %v1285_v40 }
 0x776   : > { %v1663_v15 = vpop.f32.mrf.mxu0 }
 0x778   : > { %v820_v42 = vpop.f32.mrf.mxu0 }
 0x780   : > { %v1677_v16 = vpop.f32.mrf.mxu0 }
 0x782   : > { %v1020_v43 = vpop.f32.mrf.mxu0 }
 0x783   : > { %1031 = vrot.lane.b32.xlu1 %v1020_v43, %s1894_s26 }
 0x787   : > { %1033 = vrot.lane.b32.xlu1 %v1677_v16, %s1894_s26 }
 0x7f5   : > { %v1032_v17 = vpop.permute.xlu1 %1031 }
 0x7f6   : > { %v1037_v18 = vsel %vm636_vm3, %v820_v42, %v1032_v17 }
 0x7f7   : > { %1686 = vmatprep.mubr.msk.f32.mxu1 %vm499_vm2, %v1037_v18 }
 0x7f9   : > { %v1034_v44 = vpop.permute.xlu1 %1033 }
 0x7fa   : > { %v1038_v45 = vsel %vm636_vm3, %v1663_v15, %v1034_v44 }
 0x7fb   : > { %1687 = vmatmul.mubr.msk.f32.vlgmr.msra.gmra.mxu1 %vm499_vm2, %v1038_v45 }
 0x7fc   : > { %1690 = vmatpush3.msra.mxu1 %v1183_v63 }
 0x7fd   : > { %1691 = vmatprep.subr.mxu1 %v1182_v0 }
 0x7fe   : > { %1692 = vmatpush3.msra.mxu1 %v1182_v0 }
 0x7ff   : > { %1693 = vmatprep.subr.mxu1 %v1181_v3 }
 0x800   : > { %1694 = vmatpush3.msra.mxu1 %v1181_v3 }
 0x801   : > { %1695 = vmatprep.subr.mxu1 %v1180_v4 }
 0x802   : > { %1696 = vmatpush3.msra.mxu1 %v1180_v4 }
 0x8bb   : > { %v1688_v47 = vpop.f32.mrf.mxu1 }
 0x8bc   : > { %v1137_v48 = vadd.f32 %v1688_v47, %v1565_v46 }
 0x8bd   : > { %v1131_v49 = vpop.f32.mrf.mxu1 }
 0x8be   : > { %v2214_v50 = vadd.f32 %v1137_v48, %v2123_v2  ;;  %v1132_v51 = vadd.f32 %v1565_v46, %v1131_v49 }
 0x8c0   : > { %v2217_v52 = vadd.f32 %v1132_v51, %v2121_v1  ;;  %v1145_v53 = vsel %vm499_vm2, %v2214_v50, 0.0 }
 0x8c1   : > { %1146 = vadd.xlane.f32.xlu1 %v1145_v53 }
 0x8c2   : > { %v1142_v54 = vsel %vm499_vm2, %v2217_v52, 0.0 }
 0x8c3   : > { %1143 = vadd.xlane.f32.xlu0 %v1142_v54 }
 0x94a   : > { %v1147_v55 = vpop.xlane.xlu1 %1146 }
 0x94b   : > { %v1149_v56 = vmul.f32 0.03125, %v1147_v55 }
 0x94c   : > { %v1144_v57 = vpop.xlane.xlu0 %1143 }
 0x94d   : > { %v1148_v2 = vmul.f32 0.03125, %v1144_v57  ;;  %v1151_v58 = vsub.f32 %v2214_v50, %v1149_v56  ;;  %v1575_v56 = vld [vmem:[%s1968_s19 + $0x7] ss:$0 sm:$0xff] }
 0x94f   : > { %v1150_v1 = vsub.f32 %v2217_v52, %v1148_v2  ;;  %v1153_v61 = vmul.f32 %v1151_v58, %v1151_v58 }
 0x951   : > { %v1152_v59 = vmul.f32 %v1150_v1, %v1150_v1  ;;  %v1157_v62 = vsel %vm499_vm2, %v1153_v61, 0.0 }
 0x953   : > { %v1154_v60 = vsel %vm499_vm2, %v1152_v59, 0.0 }
 0x954   : > { %1155 = vadd.xlane.f32.xlu0 %v1154_v60 }
 0x958   : > { %1158 = vadd.xlane.f32.xlu0 %v1157_v62 }
 0x9dd   : > { %v1156_v5 = vpop.xlane.xlu0 %1155 }
 0x9de   : > { %v1160_v6 = vmul.f32 0.03125, %v1156_v5 }
 0x9e0   : > { %v1162_v7 = vadd.f32 1e-05, %v1160_v6 }
 0x9e1   : > { %v1159_v8 = vpop.xlane.xlu0 %1158 }
 0x9e2   : > { %1839 = vrsqrt.f32 %v1162_v7  ;;  %v1161_v9 = vmul.f32 0.03125, %v1159_v8 }
 0x9e4   : > { %v1163_v10 = vadd.f32 1e-05, %v1161_v9 }
 0x9e6   : > { %1841 = vrsqrt.f32 %v1163_v10 }
 0x9ef   : > { %v1840_v11 = vpop.eup %1839 }
 0x9f0   : > { %v1166_v13 = vmul.f32 %v1840_v11, %v1150_v1 }
 0x9f2   : > { %v1172_v19 = vmul.f32 %v1568_v12, %v1166_v13 }
 0x9f3   : > { %v1842_v20 = vpop.eup %1841 }
 0x9f4   : > { %v1167_v21 = vmul.f32 %v1842_v20, %v1151_v58  ;;  %v1178_v22 = vadd.f32 %v1569_v14, %v1172_v19 }
 0x9f6   : > { %v1173_v23 = vmul.f32 %v1568_v12, %v1167_v21  ;;  %1697 = vmatprep.mubr.msk.f32.mxu1 %vm499_vm2, %v1178_v22 }
 0x9f8   : > { %v1179_v24 = vadd.f32 %v1569_v14, %v1173_v23 }
 0x9fa   : > { %1698 = vmatmul.mubr.msk.f32.vlgmr.msra.gmra.mxu1 %vm499_vm2, %v1179_v24 }
 0xaba   : > { %v1699_v15 = vpop.f32.mrf.mxu1 }
 0xabb   : > { %v1266_v42 = vadd.f32 %v1699_v15, %v1570_v41 }
 0xabc   : > { %v1260_v16 = vpop.f32.mrf.mxu1 }
 0xabd   : > { %v1574_v43 = vmul.f32 -1.702, %v1266_v42  ;;  %v1261_v17 = vadd.f32 %v1570_v41, %v1260_v16 }
 0xabf   : > { %v1275_v18 = vmul.f32 1.442695, %v1574_v43  ;;  %v1573_v44 = vmul.f32 -1.702, %v1261_v17 }
 0xac1   : > { %1843 = vpow2.f32 %v1275_v18  ;;  %v1273_v45 = vmul.f32 1.442695, %v1573_v44 }
 0xac3   : > { %1845 = vpow2.f32 %v1273_v45 }
 0xace   : > { %v1844_v46 = vpop.eup %1843 }
 0xacf   : > { %v1278_v47 = vadd.f32 1.0, %v1844_v46 }
 0xad0   : > { %v1846_v48 = vpop.eup %1845 }
 0xad1   : > { %v1277_v49 = vadd.f32 1.0, %v1846_v48  ;;  %1847 = vrcp.f32 %v1278_v47 }
 0xad3   : > { %1849 = vrcp.f32 %v1277_v49 }
 0xade   : > { %v1848_v51 = vpop.eup %1847 }
 0xadf   : > { %v1284_v55 = vmul.f32 %v1848_v51, %v1266_v42 }
 0xae0   : > { %v1850_v53 = vpop.eup %1849 }
 0xae1   : > { %v1283_v54 = vmul.f32 %v1850_v53, %v1261_v17 }
 0xae3   : > { %1732 = vmatprep.mubr.f32.mxu0 %v1283_v54 }
 0xae4   : > { %1733 = vmatmul.mubr.f32.vlgmr.msra.gmra.mxu0 %v1284_v55 }
 0xba4   : > { %v1734_v57 = vpop.f32.mrf.mxu0 }
 0xba5   : > { %v1377_v2 = vadd.f32 %v1734_v57, %v1575_v56 }
 0xba6   : > { %v1371_v58 = vpop.f32.mrf.mxu0 }
 0xba7   : > { %v1381_v1 = vadd.f32 %v1377_v2, %v2214_v50  ;;  %v1372_v59 = vadd.f32 %v1575_v56, %v1371_v58  ;;  %1387 = sbr.rel (%p1576_p5) target bundleno = 3188 (0xc74), region = 60 }
 0xba9   : > { %1383 = vst.msk [vmem:[#allocation2 + $0x8] sm:$0xff] %vm499_vm2, %v1381_v1  ;;  %v1380_v60 = vadd.f32 %v1372_v59, %v2217_v52 }
 0xbab   : > { %1382 = vst.msk [vmem:[#allocation2] sm:$0xff] %vm499_vm2, %v1380_v60 }
 0xbac   : > { %v1895_v61 = vmov 0.0   ;;  %vm1896_vm4 = vmmov 0   ;;  %v1388_v62 = vld [vmem:[%s2281_s4] sm:$0x3]  ;;  %vm1462_vm5 = vcmask 254976  }
 0xbad   : > { %1735 = vmatprep.subr.mxu0 %v1895_v61  ;;  %1739 = vmatprep.mubr.msk.f32.mxu0 %vm1896_vm4, %v1895_v61 }
 0xbae   : > { %1736 = vmatpush3.msra.mxu0 %v1381_v1 }
 0xbaf   : > { %1737 = vmatprep.subr.mxu0 %v1895_v61 }
 0xbb0   : > { %1738 = vmatpush3.msra.mxu0 %v1380_v60 }
 0xbb1   : > { %1740 = vmatmul.mubr.msk.f32.vlgmr.msra.gmra.mxu0 %vm636_vm3, %v1388_v62 }
 0xc71   : > { %v1458_v50 = vpop.f32.mrf.mxu0 }
 0xc72   : > { %1463 = vst.msk [vmem:[#allocation3] sm:$0x3] %vm1462_vm5, %v1458_v50 }
 0xc73   : > { %v1741_v52 = vpop.f32.mrf.mxu0 }
 0xc74 PF: > { %p1794_p6 = scmp.eq.s32.totalorder %s1949_s28, 1  ;;  %s1897_s19 = smov [#allocation3]  }
 0xc75   : > { %s1471_s29 = sshll.u32 %s1897_s19, 4  ;;  %s1472_s29 = int_to_ptr.vmem [resolvable:$true] %s1471_s29 }
 0xc76   : > { %s1851_s30 = scalar_lea.vmem %s1472_s29, 32  ;;  %p1858_p10 = scmp.lt.s32.totalorder %s1472_s29, %s1472_s29 }
 0xc77   : > { %p1852_p7 = scmp.ne.s32.totalorder %s1472_s29, %s1851_s30  ;;  %p1859_p11 = scmp.lt.s32.totalorder %s1851_s30, %s1851_s30 }
 0xc79   : > { %p1853_p8 = pnand %p1852_p7, %p1794_p6  ;;  %p1860_p12 = por %p1859_p11, %p1858_p10 }
 0xc7b   : > { %p1854_p9 = pneg %p1853_p8 }
 0xc7d   : > { %p1861_p13 = pnand %p1860_p12, %p1854_p9 }
 0xc7f   : > { %1864 = shalt.err (!%p1861_p13)
}
 0xc80   : > { %1791 = dma.vmem_to_hbm [thread:$0]  (%p1794_p6), %s1472_s29, 32, %s2285_s8, [#allocation4]  }
 0xc81   : > { %1880 = dma.done.wait (%p1794_p6), [#allocation4], 32  }
 0xc82   : > { %1882 = vsyncadd (%p1794_p6), [#allocation4], 4294967264 }
 0xc83 PF: > { %s19_s27 = sadd.s32 1, %s1885_s27  }
 0xc84   : > { %p16_p0 = scmp.ge.s32.totalorder %s19_s27, 4  }
 0xc86   :  { %18 = sbr.rel (!%p16_p0) target bundleno = 1 (0x1), region = 93 }
 0xc8b   :  { %1484 = vsyncpa [#allocation4], 1 }
 0xc8c   :  { %1486 = vsyncpa [#allocation4 + $0x1], 1 }

</bundles_post_ra>
